<compile_context>
chip_gen: v5e
topology: v5e:2x2
jax: 0.10.0
libtpu: 0.0.40
codegen_flags: <defaults>
</compile_context>

<pallas_src>
import functools

import jax
import jax.numpy as jnp
from jax.experimental import pallas as pl
from jax.experimental.pallas import tpu as pltpu

T = 32          # DenseNode.t
K = 4           # DenseNode.k
TK = T * K      # 128, the bottleneck width (exactly one lane group)
LANE = 128
BN_EPS = 1e-5
VMEM_LIMIT_BYTES = 32 * 1024 * 1024   # explicit; safe on v5e/v6e/v7x


def _round_up(x, m):
    return (x + m - 1) // m * m


def _pick_tile_m(m, max_tm=1024):
    """Largest multiple-of-8 row tile <= max_tm that still leaves >= 2 grid
    steps (so both v7x TensorCores get work); ragged tails are masked."""
    if m <= 8:
        return max(m, 1)
    tm = _round_up((m + 1) // 2, 8)
    return min(max_tm, tm)


# ----------------------------------------------------------------------------
# Kernel 1: plain 1x1 conv (row-tiled matmul), bf16 operands, f32 accumulate.
# Used for first_conv (no BN/ReLU around it in the reference module).
# ----------------------------------------------------------------------------
def _conv1x1_kernel(x_ref, w_ref, o_ref):
    o_ref[...] = jnp.dot(x_ref[...], w_ref[...],
                         preferred_element_type=jnp.float32).astype(o_ref.dtype)


def conv1x1_rows(x2d, w, out_dtype=jnp.bfloat16):
    m, cin = x2d.shape
    cout = w.shape[1]
    tm = _pick_tile_m(m)
    return pl.pallas_call(
        _conv1x1_kernel,
        out_shape=jax.ShapeDtypeStruct((m, cout), out_dtype),
        grid_spec=pltpu.PrefetchScalarGridSpec(
            num_scalar_prefetch=0,
            grid=(pl.cdiv(m, tm),),
            in_specs=[
                pl.BlockSpec((tm, cin), lambda i: (i, 0)),
                pl.BlockSpec((cin, cout), lambda i: (0, 0)),
            ],
            out_specs=pl.BlockSpec((tm, cout), lambda i: (i, 0)),
        ),
        compiler_params=pltpu.CompilerParams(
            dimension_semantics=("parallel",),
            vmem_limit_bytes=VMEM_LIMIT_BYTES),
    )(x2d, w)


# ----------------------------------------------------------------------------
# Kernel 2: fused output stage: sum_j dep_j @ W_j -> per-channel affine -> ReLU
# (last_conv + folded BatchNorm + ReLU).  Dependencies are separate refs, so
# there is no HBM concatenate; partial matmuls accumulate in-kernel.
# ----------------------------------------------------------------------------
def _out_conv_kernel(*args, num_deps):
    deps = args[:num_deps]
    ws = args[num_deps:2 * num_deps]
    s_ref, b_ref, o_ref = args[2 * num_deps:2 * num_deps + 3]
    acc = jnp.zeros(o_ref.shape, jnp.float32)
    for j in range(num_deps):
        acc = acc + jnp.dot(deps[j][...], ws[j][...],
                            preferred_element_type=jnp.float32)
    y = jnp.maximum(acc * s_ref[...] + b_ref[...], 0.0)
    o_ref[...] = y.astype(o_ref.dtype)


def out_conv_rows(deps2d, ws, scale, shift, out_dtype=jnp.float32):
    m = deps2d[0].shape[0]
    cout = ws[0].shape[1]
    tm = _pick_tile_m(m)
    in_specs = []
    for d in deps2d:
        c = d.shape[1]
        in_specs.append(pl.BlockSpec((tm, c), lambda i: (i, 0)))
    for w in ws:
        c = w.shape[0]
        in_specs.append(pl.BlockSpec((c, cout), lambda i: (0, 0)))
    in_specs += [pl.BlockSpec((1, cout), lambda i: (0, 0)),
                 pl.BlockSpec((1, cout), lambda i: (0, 0))]
    kernel = functools.partial(_out_conv_kernel, num_deps=len(deps2d))
    return pl.pallas_call(
        kernel,
        out_shape=jax.ShapeDtypeStruct((m, cout), out_dtype),
        grid_spec=pltpu.PrefetchScalarGridSpec(
            num_scalar_prefetch=0,
            grid=(pl.cdiv(m, tm),),
            in_specs=in_specs,
            out_specs=pl.BlockSpec((tm, cout), lambda i: (i, 0)),
        ),
        compiler_params=pltpu.CompilerParams(
            dimension_semantics=("parallel",),
            vmem_limit_bytes=VMEM_LIMIT_BYTES),
    )(*deps2d, *ws, scale, shift)


# ----------------------------------------------------------------------------
# Kernel 3: fully fused DenseNode.  One grid step per image:
#   acc1 = sum_j relu(dep_j * s1_j + b1_j) @ W1_j        (1x1 conv, bf16 MXU)
#   h    = relu(acc1 * s2 + b2)                          (f32, stays in VMEM)
#   hp   = zero-pad(h) spatially into a VMEM scratch     (padding=1)
#   out  = sum_{dy,dx} hp[dy:dy+H, dx:dx+W] @ W2[dy,dx]  (3x3 conv, 9 taps)
# ----------------------------------------------------------------------------
def _dense_node_kernel(*args, num_deps, H, W, cout_pad):
    deps = args[:num_deps]
    s1s = args[num_deps:2 * num_deps]
    b1s = args[2 * num_deps:3 * num_deps]
    w1s = args[3 * num_deps:4 * num_deps]
    s2_ref, b2_ref, w2_ref, o_ref, hp_ref = args[4 * num_deps:4 * num_deps + 5]

    m = H * W
    # BN1 -> ReLU -> 1x1 conv, accumulated over dependency channel groups.
    acc1 = jnp.zeros((m, TK), jnp.float32)
    for j in range(num_deps):
        cj = deps[j].shape[-1]
        x = deps[j][...].reshape(m, cj).astype(jnp.float32)
        a = jnp.maximum(x * s1s[j][...] + b1s[j][...], 0.0)   # affine in f32
        acc1 = acc1 + jnp.dot(a.astype(jnp.bfloat16), w1s[j][...],
                              preferred_element_type=jnp.float32)
    # BN2 -> ReLU (f32, never leaves VMEM).
    h = jnp.maximum(acc1 * s2_ref[...] + b2_ref[...], 0.0)

    # Zero-padded spatial copy of the intermediate for the 3x3 conv (pad=1).
    hp_ref[...] = jnp.zeros_like(hp_ref)
    hp_ref[pl.ds(1, H), pl.ds(1, W), :] = h.reshape(H, W, TK)

    # 3x3 conv as a 9-tap matmul accumulation over shifted VMEM windows.
    acc2 = jnp.zeros((m, cout_pad), jnp.float32)
    for dy in range(3):
        for dx in range(3):
            tap = dy * 3 + dx
            a = hp_ref[pl.ds(dy, H), pl.ds(dx, W), :]
            a = a.reshape(m, TK).astype(jnp.bfloat16)
            acc2 = acc2 + jnp.dot(a, w2_ref[pl.ds(tap * TK, TK), :],
                                  preferred_element_type=jnp.float32)
    o_ref[...] = acc2.reshape(1, H, W, cout_pad).astype(o_ref.dtype)


def dense_node_forward(node_params, deps):
    n, H, W, _ = deps[0].shape
    num_deps = len(deps)
    cout_pad = node_params['conv2_w'].shape[1]

    inputs, in_specs = [], []
    for d in deps:
        cs = d.shape[-1]
        in_specs.append(pl.BlockSpec((1, H, W, cs), lambda b: (b, 0, 0, 0)))
        inputs.append(d)
    for pname in ('bn1_scale', 'bn1_shift'):
        for arr in node_params[pname]:
            cs = arr.shape[-1]
            in_specs.append(pl.BlockSpec((1, cs), lambda b: (0, 0)))
            inputs.append(arr)
    for arr in node_params['conv1_w']:
        cs = arr.shape[0]
        in_specs.append(pl.BlockSpec((cs, TK), lambda b: (0, 0)))
        inputs.append(arr)
    in_specs += [pl.BlockSpec((1, TK), lambda b: (0, 0)),
                 pl.BlockSpec((1, TK), lambda b: (0, 0)),
                 pl.BlockSpec((9 * TK, cout_pad), lambda b: (0, 0))]
    inputs += [node_params['bn2_scale'], node_params['bn2_shift'],
               node_params['conv2_w']]

    kernel = functools.partial(_dense_node_kernel, num_deps=num_deps,
                               H=H, W=W, cout_pad=cout_pad)
    return pl.pallas_call(
        kernel,
        out_shape=jax.ShapeDtypeStruct((n, H, W, cout_pad), jnp.bfloat16),
        grid_spec=pltpu.PrefetchScalarGridSpec(
            num_scalar_prefetch=0,
            grid=(n,),
            in_specs=in_specs,
            out_specs=pl.BlockSpec((1, H, W, cout_pad), lambda b: (b, 0, 0, 0)),
            scratch_shapes=[pltpu.VMEM((H + 2, W + 2, TK), jnp.float32)],
        ),
        compiler_params=pltpu.CompilerParams(
            dimension_semantics=("parallel",),
            vmem_limit_bytes=VMEM_LIMIT_BYTES),
    )(*inputs)


# ----------------------------------------------------------------------------
# Dependency graph (re-implemented from ResidualPhase), BN fold, param init.
# ----------------------------------------------------------------------------
def build_dependency_graph(gene):
    graph = {1: []}
    residual = gene[-1][0] == 1
    for i in range(len(gene) - 1):
        graph[i + 2] = [j + 1 for j in range(len(gene[i])) if gene[i][j] == 1]
    graph[len(gene) + 1] = [0] if residual else []

    no_inputs, no_outputs = [], []
    for i in range(1, len(gene) + 1):
        if len(graph[i]) == 0:
            no_inputs.append(i)
        if not any(i in graph[j] for j in range(1, len(gene) + 1)):
            no_outputs.append(i)
    for node in no_outputs:
        if node not in no_inputs:
            graph[len(gene) + 1].append(node)
    for node in no_inputs:
        if node not in no_outputs:
            graph[node].append(0)
    return graph


def compute_channels(dependency, out_channels):
    return sum(out_channels if d == 0 else T for d in dependency)


def fold_bn(gamma, beta, mean, var, eps=BN_EPS):
    scale = gamma / jnp.sqrt(var + eps)
    shift = beta - mean * scale
    return scale.astype(jnp.float32), shift.astype(jnp.float32)


def _bn_init(key, c):
    k1, k2, k3, k4 = jax.random.split(key, 4)
    gamma = 0.5 + jax.random.uniform(k1, (c,), jnp.float32)
    beta = 0.1 * jax.random.normal(k2, (c,), jnp.float32)
    mean = 0.1 * jax.random.normal(k3, (c,), jnp.float32)
    var = 0.5 + jax.random.uniform(k4, (c,), jnp.float32)
    return fold_bn(gamma, beta, mean, var)


def _conv_w(key, cout, cin, ksize):
    fan_in = cin * ksize * ksize
    w = jax.random.normal(key, (cout, cin, ksize, ksize), jnp.float32)
    return w * (1.0 / jnp.sqrt(jnp.float32(fan_in)))


def _as_1x1_mat(w):          # (Cout, Cin, 1, 1) -> (Cin, Cout)
    return jnp.transpose(w[:, :, 0, 0], (1, 0))


def _as_3x3_mat(w):          # (Cout, Cin, 3, 3) -> (9*Cin, Cout) in (kh,kw,ci)
    cout, cin = w.shape[0], w.shape[1]
    return jnp.transpose(w, (2, 3, 1, 0)).reshape(9 * cin, cout)


def _pad_rows(w, rows):
    return jnp.pad(w, ((0, rows - w.shape[0]), (0, 0)))


def _pad_cols(w, cols):
    return jnp.pad(w, ((0, 0), (0, cols - w.shape[1])))


def _pad_vec(v, c_pad):      # (c,) -> (1, c_pad), zero-extended
    return jnp.pad(v, (0, c_pad - v.shape[0])).reshape(1, -1)


def init_dense_phase(key, gene, in_channels, out_channels, idx, graph):
    assert idx != 0  # TODO(synk): idx==0 first_conv (3x3 stride-1 pad-0) not implemented here.
    num_nodes = len(gene)
    out_pad = _round_up(out_channels, LANE)
    t_pad = _round_up(T, LANE)

    keys = jax.random.split(key, 4 + 4 * num_nodes)
    params = {}

    # first_conv: 1x1, in_channels -> out_channels (lane-padded output slab).
    w_fc = _as_1x1_mat(_conv_w(keys[0], out_channels, in_channels, 1))
    params['first_conv_w'] = _pad_cols(w_fc, out_pad).astype(jnp.bfloat16)

    nodes = []
    for i in range(num_nodes):
        deps = graph[i + 1]
        if not deps:
            nodes.append(None)
            continue
        dep_c = [out_channels if d == 0 else T for d in deps]
        dep_pad = [out_pad if d == 0 else t_pad for d in deps]
        cin_total = sum(dep_c)
        kb1, kc1, kb2, kc2 = keys[4 + 4 * i: 8 + 4 * i]

        s1, b1 = _bn_init(kb1, cin_total)                  # over concatenated channels
        w1 = _as_1x1_mat(_conv_w(kc1, TK, cin_total, 1))   # (cin_total, TK)
        s1s, b1s, w1s, off = [], [], [], 0
        for c, cpad in zip(dep_c, dep_pad):                # split per dependency
            s1s.append(_pad_vec(s1[off:off + c], cpad))
            b1s.append(_pad_vec(b1[off:off + c], cpad))
            w1s.append(_pad_rows(w1[off:off + c, :], cpad).astype(jnp.bfloat16))
            off += c

        s2, b2 = _bn_init(kb2, TK)
        w2 = _as_3x3_mat(_conv_w(kc2, T, TK, 3))           # (9*TK, T)
        nodes.append({
            'bn1_scale': s1s, 'bn1_shift': b1s, 'conv1_w': w1s,
            'bn2_scale': s2.reshape(1, -1), 'bn2_shift': b2.reshape(1, -1),
            'conv2_w': _pad_cols(w2, t_pad).astype(jnp.bfloat16),
        })
    params['nodes'] = nodes

    # Output stage: last_conv + BN + ReLU over the (reordered) output deps.
    out_deps = graph[num_nodes + 1]
    out_channel_flag = out_channels != T
    if out_channel_flag and 0 in out_deps:
        dep_order = [d for d in out_deps if d != 0] + [0]
    else:
        dep_order = list(out_deps)
    dep_c = [out_channels if d == 0 else T for d in dep_order]
    dep_pad = [out_pad if d == 0 else t_pad for d in dep_order]
    channel_adjustment = sum(dep_c)

    w_last = _as_1x1_mat(_conv_w(keys[1], out_channels, channel_adjustment, 1))
    ws, off = [], 0
    for c, cpad in zip(dep_c, dep_pad):
        ws.append(_pad_cols(_pad_rows(w_last[off:off + c, :], cpad), out_pad)
                  .astype(jnp.bfloat16))
        off += c
    so, bo = _bn_init(keys[2], out_channels)
    params['last_conv_w'] = ws
    params['out_dep_order'] = dep_order
    params['out_bn_scale'] = _pad_vec(so, out_pad)
    params['out_bn_shift'] = _pad_vec(bo, out_pad)
    params['out_channels'] = out_channels
    params['out_pad'] = out_pad

    in_channel_flag = in_channels != out_channels
    return params, (in_channel_flag, out_channel_flag)


# ----------------------------------------------------------------------------
# Forward pass (DensePhase.forward semantics, BatchNorm in inference mode).
# ----------------------------------------------------------------------------
def dense_phase_forward(params, x_nchw, graph, num_nodes, in_channel_flag,
                        out_channel_flag):
    x = jnp.transpose(x_nchw, (0, 2, 3, 1)).astype(jnp.float32)   # NCHW -> NHWC
    n, h, w, cin = x.shape
    m = n * h * w
    out_pad = params['out_pad']
    out_channels = params['out_channels']

    if in_channel_flag:
        x0 = conv1x1_rows(x.reshape(m, cin).astype(jnp.bfloat16),
                          params['first_conv_w']).reshape(n, h, w, out_pad)
    else:
        # Lane-pad the raw input once so every dependency slab is 128-aligned.
        x0 = jnp.pad(x, ((0, 0), (0, 0), (0, 0),
                         (0, out_pad - cin))).astype(jnp.bfloat16)

    outputs = [x0]
    for i in range(1, num_nodes + 1):
        if not graph[i]:
            outputs.append(None)
        else:
            deps = [outputs[j] for j in graph[i]]
            outputs.append(dense_node_forward(params['nodes'][i - 1], deps))

    order = params['out_dep_order']
    if out_channel_flag:
        deps2d = [outputs[j].reshape(m, outputs[j].shape[-1]) for j in order]
        y2d = out_conv_rows(deps2d, params['last_conv_w'],
                            params['out_bn_scale'], params['out_bn_shift'])
        y = y2d.reshape(n, h, w, out_pad)[..., :out_channels]
    else:
        # Mirrors the reference's torch.cat(...) with default dim=0 (almost
        # certainly a bug inherited from the original module; only well defined
        # for a single output dependency).
        # TODO(synk): multi-dep + out_channel_flag=False is ill-defined upstream.
        cat = jnp.concatenate([outputs[j] for j in order], axis=0)
        m2 = cat.shape[0] * h * w
        y2d = out_conv_rows([cat.reshape(m2, cat.shape[-1])],
                            [jnp.concatenate(params['last_conv_w'], axis=0)],
                            params['out_bn_scale'], params['out_bn_shift'])
        y = y2d.reshape(cat.shape[0], h, w, out_pad)[..., :out_channels]

    return jnp.transpose(y, (0, 3, 1, 2))                          # NHWC -> NCHW


if __name__ == "__main__":
    # Small synthetic instance: 2 dense nodes, residual connection to output.
    gene = [[1], [1]]
    in_channels, out_channels, idx = 4, 16, 1
    N, H, W = 2, 16, 16

    graph = build_dependency_graph(gene)
    key = jax.random.PRNGKey(0)
    k_x, k_p = jax.random.split(key)
    params, (in_flag, out_flag) = init_dense_phase(k_p, gene, in_channels,
                                                   out_channels, idx, graph)

    x = jax.random.normal(k_x, (N, in_channels, H, W), jnp.float32)
    y = dense_phase_forward(params, x, graph, len(gene), in_flag, out_flag)
    y = jax.block_until_ready(y)

    assert y.shape == (N, out_channels, H, W), y.shape
    assert bool(jnp.all(jnp.isfinite(y)))
    print("KERNEL_OK")
</pallas_src>

<mosaic_0001>
module attributes {stable_mosaic.version = 11 : i64} {
  func.func @_conv1x1_kernel(%arg0: i32, %arg1: memref<256x4xbf16, #tpu.memory_space<vmem>>, %arg2: memref<4x128xbf16, #tpu.memory_space<vmem>>, %arg3: memref<256x128xbf16, #tpu.memory_space<vmem>>) attributes {dimension_semantics = [#tpu.dimension_semantics<parallel>], iteration_bounds = array<i64: 2>, scalar_prefetch = 0 : i64, scratch_operands = 0 : i64, tpu.core_type = #tpu.core_type<tc>, window_params = [{transform_indices = @transform_0, window_bounds = array<i64: 256, 4>}, {pipeline_mode = #tpu.pipeline_mode<synchronous>, transform_indices = @transform_1, window_bounds = array<i64: 4, 128>}, {transform_indices = @transform_2, window_bounds = array<i64: 256, 128>}]} {
    %c0 = arith.constant 0 : index
    %c0_0 = arith.constant 0 : index
    %0 = vector.load %arg1[%c0, %c0_0] : memref<256x4xbf16, #tpu.memory_space<vmem>>, vector<256x4xbf16>
    %c0_1 = arith.constant 0 : index
    %c0_2 = arith.constant 0 : index
    %1 = vector.load %arg2[%c0_1, %c0_2] : memref<4x128xbf16, #tpu.memory_space<vmem>>, vector<4x128xbf16>
    %cst = arith.constant dense<0.000000e+00> : vector<256x128xf32>
    %2 = tpu.matmul %0, %1, %cst {dimension_numbers = #tpu.dot_dimension_numbers<[1], [0], [0], [1], [0, 0, 1, 1], [], []>} : vector<256x4xbf16>, vector<4x128xbf16>, vector<256x128xf32> -> vector<256x128xf32>
    %3 = arith.truncf %2 : vector<256x128xf32> to vector<256x128xbf16>
    %c0_3 = arith.constant 0 : index
    %c0_4 = arith.constant 0 : index
    %4 = vector.load %arg3[%c0_3, %c0_4] : memref<256x128xbf16, #tpu.memory_space<vmem>>, vector<256x128xbf16>
    tpu.vector_store %arg3[%c0_3, %c0_4], %3 {strides = array<i32>} : memref<256x128xbf16, #tpu.memory_space<vmem>>, vector<256x128xbf16>,
    return
  }
  func.func @transform_0(%arg0: i32) -> (i32, i32) {
    %c0_i32 = arith.constant 0 : i32
    %c0_i32_0 = arith.constant 0 : i32
    return %arg0, %c0_i32 : i32, i32
  }
  func.func @transform_1(%arg0: i32) -> (i32, i32) {
    %c0_i32 = arith.constant 0 : i32
    %c0_i32_0 = arith.constant 0 : i32
    %c0_i32_1 = arith.constant 0 : i32
    return %c0_i32, %c0_i32_0 : i32, i32
  }
  func.func @transform_2(%arg0: i32) -> (i32, i32) {
    %c0_i32 = arith.constant 0 : i32
    %c0_i32_0 = arith.constant 0 : i32
    return %arg0, %c0_i32 : i32, i32
  }
}

</mosaic_0001>

<bundles_post_ra>
// kernel: tpu_custom_call.1
= control target key start
LH: loop header
LB: loop body
LE: loop exit
PB: predicated region body
PF: predicated region fallthrough
CT: control target
= control target key end

     0   :  { %7 = vsyncpa [#allocation3], 0  ;;  %s998_s0 = inlined_call_operand.vmem [shape: bf16[512,4], index: 0, kind: input, shape index: {}]   ;;  %s999_s1 = inlined_call_operand.vmem [shape: bf16[4,128], index: 1, kind: input, shape index: {}]   ;;  %s1000_s2 = inlined_call_operand.hbm [shape: bf16[512,128], index: 2, kind: output, shape index: {}]  }
   0x1   :  { %9 = vsyncpa [#allocation3 + $0x1], 0  ;;  %s872_s9 = smov 0   ;;  %s874_s10 = smov 0  }
   0x2   :  { %s876_s11 = smov 0   ;;  %s878_s12 = smov 0  }
   0x3 LB: > { %s893_s13 = sadd.s32 4294967295, %s853_s12   ;;  %s543_s14 = sadd.s32 4294967294, %s853_s12   ;;  %s853_s12 = sphi %s878_s12, %s1006_s12   ;;  %s849_s11 = sphi %s876_s11, %s1005_s11   ;;  %s845_s10 = sphi %s874_s10, %s1004_s10   ;;  %s841_s9 = sphi %s872_s9, %s1003_s9  }
   0x4   : > { %s897_s15 = sadd.s32 1, %s853_s12   ;;  %s69_s16 = sadd.s32 1, %s849_s11 }
   0x5   : > { %s66_s17 = ssub.s32 %s853_s12, %s897_s15  ;;  %p79_p0 = scmp.ne.s32.totalorder %s849_s11, %s845_s10 }
   0x6   : > { %p67_p1 = scmp.eq.s32.totalorder %s66_s17, 0  ;;  %p80_p2 = scmp.eq.s32.totalorder %s893_s13, 1 }
   0x7   : > { %p85_p3 = scmp.ne.s32.totalorder %s845_s10, %s841_s9  ;;  %p86_p4 = scmp.eq.s32.totalorder %s543_s14, 1 }
   0x8   : > { %s908_s18 = scalar_select %p67_p1, %s849_s11, %s69_s16  }
   0x9   : > { %p910_p5 = por %p80_p2, %p79_p0  ;;  %p914_p6 = por %p86_p4, %p85_p3 }
   0xa   : > { %p546_p7 = scmp.ge.s32.totalorder %s853_s12, 1  ;;  %p116_p8 = scmp.lt.s32.totalorder %s853_s12, 3 }
   0xc   : > { %p117_p9 = pnand %p546_p7, %p116_p8 }
   0xd   : > { %s548_s23 = sshll.u32 (!%p117_p9), %s893_s13, 5  ;;  %s135_s28 = sand.u32 (!%p117_p9), 1, %s845_s10  }
   0xe   : > { %120 = sbr.rel (%p117_p9) target bundleno = 220 (0xdc), region = 28  ;;  %p139_p10 = scmp.lt.s32.totalorder (!%p117_p9), %s548_s23, 63 }
   0xf   : > { %s547_s29 = sshll.u32 (!%p117_p9), %s135_s28, 7  ;;  %s651_s3 = sshll.u32 (!%p117_p9), %s893_s13, 7 }
  0x10   : > { %s946_s30 = scalar_lea.vmem (!%p117_p9), [#allocation2], %s547_s29  ;;  %s477_s6 = scalar_lea.hbm (!%p117_p9), %s1000_s2, %s651_s3 }
  0x11   : > { %s478_s7 = sshll.u32 (!%p117_p9), %s946_s30, 4  ;;  %s480_s8 = sshll.u32 (!%p117_p9), %s477_s6, 4  ;;  %s479_s7 = int_to_ptr.vmem [resolvable:$true] %s478_s7  ;;  %s481_s8 = int_to_ptr.hbm [resolvable:$true] %s480_s8 }
  0x12   : > { %s466_s13 = scalar_lea.sflag (!%p117_p9), [#allocation3], %s135_s28  ;;  %s805_s14 = sshra.s32 (!%p117_p9), %s481_s8, 4  ;;  %s806_s14 = int_to_ptr.hbm [resolvable:$true] %s805_s14 }
  0x13   : > { %v178_v0 = vld [vmem:[%s999_s1] sm:$0x3]  ;;  %vm308_vm0 = vcmask 1041408   ;;  %s1008_s23 = smov (!%p139_p10, %s548_s23), 63  ;;  %vm259_vm1 = vcmask 31744   ;;  %s807_s16 = scalar_lea.hbm %s806_s14, 128 }
  0x14   : > { %v310_v1 = vsel %vm308_vm0, %v178_v0, 0  ;;  %s549_s24 = sshll.u32 %s1008_s23, 2  ;;  %p808_p11 = scmp.ne.s32.totalorder %s806_s14, %s807_s16 }
  0x15   : > { %319 = vmatpush.bf16.msra.mxu0 %v310_v1  ;;  %747 = vmatpush.bf16.msra.mxu1 %v310_v1  ;;  %s142_s27 = scalar_lea.vmem %s998_s0, %s549_s24  ;;  %s811_s22 = scalar_lea.hbm %s1000_s2, 256 }
  0x16   : > { %748 = vmatpush.bf16.msra.mxu2 %v310_v1  ;;  %749 = vmatpush.bf16.msra.mxu3 %v310_v1  ;;  %v635_v2 = vld [vmem:[%s142_s27] sm:$0xff]  ;;  %v636_v6 = vld [vmem:[%s142_s27 + $0x8] sm:$0xff]  ;;  %v637_v10 = vld [vmem:[%s142_s27 + $0x10] sm:$0xff]  ;;  %p809_p12 = pnand %p808_p11, %p910_p5  ;;  %p812_p0 = scmp.lt.s32.totalorder %s806_s14, %s1000_s2 }
  0x17   : > { %v639_v3 = vld [vmem:[%s142_s27 + $0x20] sm:$0xff]  ;;  %v640_v7 = vld [vmem:[%s142_s27 + $0x28] sm:$0xff]  ;;  %v641_v11 = vld [vmem:[%s142_s27 + $0x30] sm:$0xff]  ;;  %p813_p1 = scmp.lt.s32.totalorder %s811_s22, %s807_s16 }
  0x18   : > { %v643_v4 = vld [vmem:[%s142_s27 + $0x40] sm:$0xff]  ;;  %614 = vmatmul.msk.bf16.vlgmr.msra.gmra.mxu0 %vm259_vm1, %v635_v2  ;;  %618 = vmatmul.msk.bf16.vlgmr.msra.gmra.mxu1 %vm259_vm1, %v639_v3  ;;  %v644_v8 = vld [vmem:[%s142_s27 + $0x48] sm:$0xff]  ;;  %v645_v12 = vld [vmem:[%s142_s27 + $0x50] sm:$0xff]  ;;  %p810_p13 = pneg %p809_p12 }
  0x19   : > { %v647_v5 = vld [vmem:[%s142_s27 + $0x60] sm:$0xff]  ;;  %622 = vmatmul.msk.bf16.vlgmr.msra.gmra.mxu2 %vm259_vm1, %v643_v4  ;;  %v648_v9 = vld [vmem:[%s142_s27 + $0x68] sm:$0xff]  ;;  %v649_v13 = vld [vmem:[%s142_s27 + $0x70] sm:$0xff]  ;;  %p814_p2 = por %p813_p1, %p812_p0 }
  0x1a   : > { %626 = vmatmul.msk.bf16.vlgmr.msra.gmra.mxu3 %vm259_vm1, %v647_v5  ;;  %v638_v14 = vld [vmem:[%s142_s27 + $0x18] sm:$0xff] }
  0x1b   : > { %v642_v15 = vld [vmem:[%s142_s27 + $0x38] sm:$0xff]  ;;  %p815_p3 = pnand %p814_p2, %p810_p13 }
  0x1c   : > { %v646_v16 = vld [vmem:[%s142_s27 + $0x58] sm:$0xff] }
  0x1d   : > { %v650_v17 = vld [vmem:[%s142_s27 + $0x78] sm:$0xff] }
  0x28   : > { %615 = vmatmul.msk.bf16.gmra.mxu0 %vm259_vm1, %v636_v6  ;;  %619 = vmatmul.msk.bf16.gmra.mxu1 %vm259_vm1, %v640_v7 }
  0x29   : > { %623 = vmatmul.msk.bf16.gmra.mxu2 %vm259_vm1, %v644_v8 }
  0x2a   : > { %627 = vmatmul.msk.bf16.gmra.mxu3 %vm259_vm1, %v648_v9 }
  0x38   : > { %616 = vmatmul.msk.bf16.gmra.mxu0 %vm259_vm1, %v637_v10  ;;  %620 = vmatmul.msk.bf16.gmra.mxu1 %vm259_vm1, %v641_v11 }
  0x39   : > { %624 = vmatmul.msk.bf16.gmra.mxu2 %vm259_vm1, %v645_v12 }
  0x3a   : > { %628 = vmatmul.msk.bf16.gmra.mxu3 %vm259_vm1, %v649_v13 }
  0x48   : > { %617 = vmatmul.msk.bf16.gmra.mxu0 %vm259_vm1, %v638_v14  ;;  %621 = vmatmul.msk.bf16.gmra.mxu1 %vm259_vm1, %v642_v15 }
  0x49   : > { %625 = vmatmul.msk.bf16.gmra.mxu2 %vm259_vm1, %v646_v16 }
  0x4a   : > { %629 = vmatmul.msk.bf16.gmra.mxu3 %vm259_vm1, %v650_v17 }
  0x95   : > { %v321_v18 = vpop.f32.mrf.mxu0  ;;  %v341_v19 = vpop.f32.mrf.mxu1 }
  0x9c   : > { %v361_v20 = vpop.f32.mrf.mxu2 }
  0x9d   : > { %v381_v21 = vpop.f32.mrf.mxu3  ;;  %v323_v22 = vpop.f32.mrf.mxu0 }
  0x9e   : > { %v343_v23 = vpop.f32.mrf.mxu1  ;;  %v655_v24 = vpack.c.bf16 %v323_v22, %v321_v18 }
  0x9f   : > { %v675_v25 = vpack.c.bf16 %v343_v23, %v341_v19 }
  0xa0   : > { %656 = vst [vmem:[%s946_s30] sm:$0xff] %v655_v24  }
  0xa1   : > { %735 = vst [vmem:[%s946_s30 + $0x20] sm:$0xff] %v675_v25  }
  0xa4   : > { %v363_v26 = vpop.f32.mrf.mxu2 }
  0xa5   : > { %v383_v27 = vpop.f32.mrf.mxu3  ;;  %v695_v28 = vpack.c.bf16 %v363_v26, %v361_v20  ;;  %v326_v30 = vpop.f32.mrf.mxu0 }
  0xa6   : > { %v715_v29 = vpack.c.bf16 %v383_v27, %v381_v21  ;;  %v346_v31 = vpop.f32.mrf.mxu1 }
  0xa7   : > { %739 = vst [vmem:[%s946_s30 + $0x40] sm:$0xff] %v695_v28  }
  0xa8   : > { %743 = vst [vmem:[%s946_s30 + $0x60] sm:$0xff] %v715_v29  }
  0xac   : > { %v366_v32 = vpop.f32.mrf.mxu2 }
  0xad   : > { %v386_v33 = vpop.f32.mrf.mxu3  ;;  %v328_v34 = vpop.f32.mrf.mxu0 }
  0xae   : > { %v348_v35 = vpop.f32.mrf.mxu1  ;;  %v660_v36 = vpack.c.bf16 %v328_v34, %v326_v30 }
  0xaf   : > { %v680_v37 = vpack.c.bf16 %v348_v35, %v346_v31 }
  0xb0   : > { %732 = vst [vmem:[%s946_s30 + $0x8] sm:$0xff] %v660_v36  }
  0xb1   : > { %736 = vst [vmem:[%s946_s30 + $0x28] sm:$0xff] %v680_v37  }
  0xb4   : > { %v368_v38 = vpop.f32.mrf.mxu2 }
  0xb5   : > { %v388_v39 = vpop.f32.mrf.mxu3  ;;  %v700_v40 = vpack.c.bf16 %v368_v38, %v366_v32  ;;  %v331_v42 = vpop.f32.mrf.mxu0 }
  0xb6   : > { %v720_v41 = vpack.c.bf16 %v388_v39, %v386_v33  ;;  %v351_v43 = vpop.f32.mrf.mxu1 }
  0xb7   : > { %740 = vst [vmem:[%s946_s30 + $0x48] sm:$0xff] %v700_v40  }
  0xb8   : > { %744 = vst [vmem:[%s946_s30 + $0x68] sm:$0xff] %v720_v41  }
  0xbc   : > { %v371_v44 = vpop.f32.mrf.mxu2 }
  0xbd   : > { %v391_v45 = vpop.f32.mrf.mxu3  ;;  %v333_v46 = vpop.f32.mrf.mxu0 }
  0xbe   : > { %v353_v47 = vpop.f32.mrf.mxu1  ;;  %v665_v48 = vpack.c.bf16 %v333_v46, %v331_v42 }
  0xbf   : > { %v685_v49 = vpack.c.bf16 %v353_v47, %v351_v43 }
  0xc0   : > { %733 = vst [vmem:[%s946_s30 + $0x10] sm:$0xff] %v665_v48  }
  0xc1   : > { %737 = vst [vmem:[%s946_s30 + $0x30] sm:$0xff] %v685_v49  }
  0xc4   : > { %v373_v50 = vpop.f32.mrf.mxu2 }
  0xc5   : > { %v393_v51 = vpop.f32.mrf.mxu3  ;;  %v705_v52 = vpack.c.bf16 %v373_v50, %v371_v44  ;;  %v336_v54 = vpop.f32.mrf.mxu0 }
  0xc6   : > { %v725_v53 = vpack.c.bf16 %v393_v51, %v391_v45  ;;  %v356_v55 = vpop.f32.mrf.mxu1 }
  0xc7   : > { %741 = vst [vmem:[%s946_s30 + $0x50] sm:$0xff] %v705_v52  }
  0xc8   : > { %745 = vst [vmem:[%s946_s30 + $0x70] sm:$0xff] %v725_v53  }
  0xcc   : > { %v376_v56 = vpop.f32.mrf.mxu2 }
  0xcd   : > { %v396_v57 = vpop.f32.mrf.mxu3  ;;  %v338_v58 = vpop.f32.mrf.mxu0 }
  0xce   : > { %v358_v59 = vpop.f32.mrf.mxu1  ;;  %v670_v60 = vpack.c.bf16 %v338_v58, %v336_v54 }
  0xcf   : > { %v690_v61 = vpack.c.bf16 %v358_v59, %v356_v55 }
  0xd0   : > { %734 = vst [vmem:[%s946_s30 + $0x18] sm:$0xff] %v670_v60  }
  0xd1   : > { %738 = vst [vmem:[%s946_s30 + $0x38] sm:$0xff] %v690_v61  }
  0xd4   : > { %v378_v62 = vpop.f32.mrf.mxu2 }
  0xd5   : > { %v398_v63 = vpop.f32.mrf.mxu3  ;;  %v710_v0 = vpack.c.bf16 %v378_v62, %v376_v56 }
  0xd6   : > { %v730_v1 = vpack.c.bf16 %v398_v63, %v396_v57 }
  0xd7   : > { %742 = vst [vmem:[%s946_s30 + $0x58] sm:$0xff] %v710_v0  }
  0xd8   : > { %746 = vst [vmem:[%s946_s30 + $0x78] sm:$0xff] %v730_v1  }
  0xd9   : > { %818 = shalt.err (!%p815_p3)
}
  0xda   : > { %s855_s25 = smov 64   ;;  %s856_s26 = smov 4  }
  0xdb   : > { %750 = dma.vmem_to_hbm [thread:$0]  (%p910_p5), %s479_s7, 2048, %s481_s8, %s466_s13, %s855_s25, %s855_s25, %s856_s26  }
  0xdc PF: > { %p756_p4 = scmp.ge.s32.totalorder %s853_s12, 2  ;;  %s495_s27 = sand.u32 1, %s841_s9  }
  0xdd   : > { %s496_s28 = scalar_lea.sflag [#allocation3], %s495_s27 }
  0xde   : > { %p753_p7 = pnand %p756_p4, %p914_p6 }
  0xe0   : > { %p754_p8 = pneg %p753_p7 }
  0xe2   : > { %836 = dma.done.wait (%p754_p8), %s496_s28, 2048  }
  0xe3   : > { %838 = vsyncadd (%p754_p8), %s496_s28, 4294965248  ;;  %p12_p9 = scmp.ge.s32.totalorder %s897_s15, 4   ;;  %s1003_s9 = smov %s845_s10 }
  0xe4   : > { %s1004_s10 = smov %s849_s11  ;;  %s1005_s11 = smov %s908_s18 }
  0xe5   : > { %s1006_s12 = smov %s897_s15  ;;  %14 = sbr.rel (!%p12_p9) target bundleno = 3 (0x3), region = 63 }
  0xea   :  { %502 = vsyncpa [#allocation3], 1 }
  0xeb   :  { %504 = vsyncpa [#allocation3 + $0x1], 1 }

</bundles_post_ra>
